<compile_context>
chip_gen: v6e
topology: v6e:2x2x1
jax: 0.10.0
libtpu: 0.0.40
codegen_flags: <defaults>
</compile_context>

<pallas_src>
import jax
import jax.numpy as jnp
from jax.experimental import pallas as pl
from jax.experimental.pallas import tpu as pltpu


def mock_game_loss_kernel(param_ref, loss_ref):
    # loss <- param. Pure scalar path (SMEM): one sld + one sst, no
    # VMEM/vreg/MXU traffic. Single store also pins the kernel against DCE.
    loss_ref[0] = param_ref[0]


# Single pallas_call: scalar identity "loss = param" on the SMEM path.
# No grid, no scratch, no aliasing (param must remain a live, trainable buffer).
_loss_call = pl.pallas_call(
    mock_game_loss_kernel,
    out_shape=jax.ShapeDtypeStruct((1,), jnp.float32),
    in_specs=[pl.BlockSpec(memory_space=pltpu.MemorySpace.SMEM)],
    out_specs=pl.BlockSpec(memory_space=pltpu.MemorySpace.SMEM),
    cost_estimate=pl.CostEstimate(flops=0, transcendentals=0, bytes_accessed=8),
)


def mock_game_forward(param):
    """param: (1,) float32 -> (loss (1,), interaction dict with aux['acc'] (1,))."""
    loss = _loss_call(param)

    # Hoisted constant: under jit XLA folds this at compile time — no kernel
    # output, no BlockSpec, no writeback DMA for it.
    acc = jnp.ones((1,), dtype=jnp.float32)

    # TODO(synk): core.Interaction has no JAX/Pallas equivalent; represented as a dict.
    interaction = {"aux": {"acc": acc}}
    return loss, interaction


# Jitted entry point: single compiled executable, dispatch overhead amortized,
# `acc` constant-folded. The pallas custom call is the only runtime op left.
mock_game_forward_jit = jax.jit(mock_game_forward)


if __name__ == "__main__":
    # Deterministic init, matching torch.nn.Parameter(torch.Tensor([0])).
    key = jax.random.PRNGKey(0)  # unused (param is exactly zero), kept for convention
    param = jnp.zeros((1,), dtype=jnp.float32)

    loss, interaction = mock_game_forward_jit(param)
    jax.block_until_ready((loss, interaction))

    assert loss.shape == (1,) and float(loss[0]) == 0.0
    acc = interaction["aux"]["acc"]
    assert acc.shape == (1,) and float(acc[0]) == 1.0

    # param buffer is still live and unchanged (no donation / aliasing).
    assert float(param[0]) == 0.0

    print("KERNEL_OK")
</pallas_src>

<mosaic_0001>
module attributes {stable_mosaic.version = 11 : i64} {
  func.func @mock_game_loss_kernel(%arg0: memref<1xf32, #tpu.memory_space<smem>>, %arg1: memref<1xf32, #tpu.memory_space<smem>>) attributes {dimension_semantics = [], scalar_prefetch = 0 : i64, scratch_operands = 0 : i64, tpu.core_type = #tpu.core_type<tc>} {
    %c0 = arith.constant 0 : index
    %0 = memref.load %arg0[%c0] : memref<1xf32, #tpu.memory_space<smem>>
    %c0_0 = arith.constant 0 : index
    %1 = memref.load %arg1[%c0_0] : memref<1xf32, #tpu.memory_space<smem>>
    memref.store %0, %arg1[%c0_0] : memref<1xf32, #tpu.memory_space<smem>>
    return
  }
}

</mosaic_0001>

<bundles_post_ra>
// kernel: mock_game_forward.1
= control target key start
LH: loop header
LB: loop body
LE: loop exit
PB: predicated region body
PF: predicated region fallthrough
CT: control target
= control target key end

     0   :  { %7 = vsyncpa [#allocation4], 0  ;;  %s37_s8 = smov [#allocation3]   ;;  %s54_s0 = inlined_call_operand.<no memory space> [shape: f32[1], index: 0, kind: input, shape index: {}]   ;;  %s55_s1 = inlined_call_operand.hbm [shape: f32[1], index: 1, kind: output, shape index: {}]  }
   0x1   :  { %12 = sst [smem:[#allocation3]] %s54_s0 }
   0x2   :  { %20 = dma.smem_to_hbm %s37_s8, 16, %s55_s1, [#allocation4]  }
   0x3   :  { %35 = dma.done.wait [#allocation4], 16  }
   0x4   :  { %36 = vsyncadd [#allocation4], 4294967280 }
   0x5   :  { %24 = sfence }
   0x6   :  { %25 = vsyncpa [#allocation4], 1 }

</bundles_post_ra>
